<compile_context>
chip_gen: v6e
topology: v6e:2x2x1
jax: 0.10.0
libtpu: 0.0.40
codegen_flags: <defaults>
</compile_context>

<pallas_src>
import jax
import jax.numpy as jnp
from jax import lax
from jax.experimental import pallas as pl
from jax.experimental.pallas import tpu as pltpu

# Defaults from the module's __init__.
FEATURE_WEIGHTS = {"landmarks": 1.0, "au": 0.8, "pose": 0.6, "gaze": 0.4}
FEATURE_ORDER = ("landmarks", "au", "pose", "gaze")

_SUBLANES = 8
_CHUNK_ROWS = 64            # rows of one feature held in registers at a time
_MAX_TILE_ROWS = 1024       # DMA block height (multiple of 8). ~10 MiB of
                            # double-buffered f32 blocks for the 4 default
                            # features -> fits the scoped-VMEM default on
                            # v5e/v6e/v7x.  Bump to 2048 on v7x if desired.
_MIN_ELEMENTS_FOR_PALLAS = 1 << 15   # below this, plain jnp is faster


def _fold_to_sublane(x):
    """Sum (rows, C) -> (8, C) using static 8-row slices + a pairwise tree.

    rows must be a static multiple of 8.  Pure VPU adds, no XLU traffic.
    """
    rows = x.shape[0]
    chunks = [x[j * _SUBLANES:(j + 1) * _SUBLANES, :]
              for j in range(rows // _SUBLANES)]
    while len(chunks) > 1:
        nxt = [a + b for a, b in zip(chunks[0::2], chunks[1::2])]
        if len(chunks) % 2:
            nxt.append(chunks[-1])
        chunks = nxt
    return chunks[0]


def _accum_feature_tile(p_ref, g_ref, acc_ref, *, step, tile_rows, n_rows,
                        masked):
    """Add sum((p-g)^2) over this tile's valid rows into acc_ref ((8,C) f32)."""
    c = p_ref.shape[-1]

    def sq_diff(base, rows):
        p = p_ref[pl.ds(base, rows), :].astype(jnp.float32)
        g = g_ref[pl.ds(base, rows), :].astype(jnp.float32)
        d = p - g
        d2 = d * d
        if masked:
            gl = (step * tile_rows + base
                  + lax.broadcasted_iota(jnp.int32, (rows, 1), 0))
            d2 = jnp.where(gl < n_rows, d2, 0.0)
        return d2

    n_full = tile_rows // _CHUNK_ROWS
    rem = tile_rows % _CHUNK_ROWS

    if n_full > 0:
        def body(i, carry):
            base = pl.multiple_of(i * _CHUNK_ROWS, _CHUNK_ROWS)
            return carry + _fold_to_sublane(sq_diff(base, _CHUNK_ROWS))

        carry = lax.fori_loop(0, n_full, body,
                              jnp.zeros((_SUBLANES, c), jnp.float32),
                              unroll=min(4, n_full))
        acc_ref[...] += carry

    if rem:
        base = n_full * _CHUNK_ROWS                  # static Python int
        rem8 = (rem // _SUBLANES) * _SUBLANES
        tail = rem % _SUBLANES
        if rem8:
            acc_ref[...] += _fold_to_sublane(sq_diff(base, rem8))
        if tail:
            acc_ref[0:tail, :] += sq_diff(base + rem8, tail)


def _make_kernel(n_feat, tile_rows, n_rows, need_mask, inv_counts, weights):
    """inv_counts[f] = 1/N_f and weights[f] are trace-time constants."""

    def kernel(*refs):
        p_refs = refs[0:2 * n_feat:2]
        g_refs = refs[1:2 * n_feat:2]
        out_ref = refs[2 * n_feat]
        acc_refs = refs[2 * n_feat + 1:]

        step = pl.program_id(0)
        last = pl.num_programs(0) - 1

        @pl.when(step == 0)
        def _init():
            for acc in acc_refs:
                acc[...] = jnp.zeros_like(acc)

        def accumulate(masked):
            for f in range(n_feat):
                _accum_feature_tile(p_refs[f], g_refs[f], acc_refs[f],
                                    step=step, tile_rows=tile_rows,
                                    n_rows=n_rows, masked=masked)

        if need_mask:
            # Keep the hot path (all but the last tile) free of selects.
            @pl.when(step < last)
            def _full_tiles():
                accumulate(masked=False)

            @pl.when(step == last)
            def _boundary_tile():
                accumulate(masked=True)
        else:
            accumulate(masked=False)

        @pl.when(step == last)
        def _finalize():
            total = jnp.float32(0.0)
            for f in range(n_feat):
                # One cross-lane reduce per feature, once per kernel.
                loss_f = jnp.sum(acc_refs[f][...]) * jnp.float32(inv_counts[f])
                out_ref[f] = loss_f
                total = total + jnp.float32(weights[f]) * loss_f
            out_ref[n_feat] = total

    return kernel


def _loss_reference_jnp(gt_features, pred_features, weights_map, names):
    losses = {}
    total = jnp.float32(0.0)
    for n in names:
        d = (pred_features[n].astype(jnp.float32)
             - gt_features[n].astype(jnp.float32))
        loss = jnp.mean(d * d)
        losses[n] = loss
        total = total + jnp.float32(weights_map.get(n, 1.0)) * loss
    return total, losses


def multi_facial_reconstruction_loss(gt_features, pred_features,
                                     feature_weights=None,
                                     use_pallas=None,
                                     max_tile_rows=_MAX_TILE_ROWS):
    """Mirrors MultiFacialReconstructionLoss.forward.

    Args:
      gt_features / pred_features: dicts of float arrays, shape (B, T, D_f).
      feature_weights: optional {name: weight}; defaults to the module's.
      use_pallas: None = auto (size threshold); True/False = force.
      max_tile_rows: DMA block height (rows per grid step).
    Returns:
      (total_loss, {name: loss}) as float32 scalars.
    """
    weights_map = FEATURE_WEIGHTS if feature_weights is None else feature_weights
    names = [n for n in FEATURE_ORDER
             if n in gt_features and n in pred_features]
    if not names:
        return jnp.float32(0.0), {}

    # Free 2-D views (rows, D_f) of each feature -- no pad/concat/copy.
    p2d, g2d, counts, lanes = [], [], [], []
    rows = None
    shapes_ok = True
    for n in names:
        p, g = pred_features[n], gt_features[n]
        if p.shape != g.shape or p.size == 0:
            shapes_ok = False
            break
        c = p.shape[-1] if p.ndim >= 1 else 1
        p2 = jnp.reshape(p, (-1, c))
        g2 = jnp.reshape(g, (-1, c))
        if rows is None:
            rows = p2.shape[0]
        shapes_ok &= (p2.shape[0] == rows)
        p2d.append(p2)
        g2d.append(g2)
        counts.append(int(p.size))
        lanes.append(int(c))

    total_elems = sum(counts)
    if use_pallas is None:
        use_pallas = shapes_ok and total_elems >= _MIN_ELEMENTS_FOR_PALLAS
    if not shapes_ok:
        # TODO(synk): per-feature grids for mismatched leading dims / empty features.
        use_pallas = False
    if not use_pallas:
        return _loss_reference_jnp(gt_features, pred_features, weights_map, names)

    n_feat = len(names)
    tile_rows = rows if rows <= max_tile_rows else max_tile_rows
    if tile_rows != rows and tile_rows % _SUBLANES:
        tile_rows -= tile_rows % _SUBLANES        # blocks must be 8-row aligned
    grid = (pl.cdiv(rows, tile_rows),)
    need_mask = (rows % tile_rows) != 0

    inv_counts = tuple(1.0 / float(cnt) for cnt in counts)
    weights = tuple(float(weights_map.get(n, 1.0)) for n in names)

    kernel = _make_kernel(n_feat, tile_rows, rows, need_mask,
                          inv_counts, weights)

    in_specs, inputs = [], []
    for f in range(n_feat):
        spec = pl.BlockSpec((tile_rows, lanes[f]), lambda i: (i, 0))
        in_specs += [spec, spec]
        inputs += [p2d[f], g2d[f]]

    # TODO(synk): optional leading size-2 "parallel" axis for a v7x megacore
    # split (two partial accumulator sets combined in the wrapper).
    out = pl.pallas_call(
        kernel,
        out_shape=jax.ShapeDtypeStruct((n_feat + 1,), jnp.float32),
        grid=grid,
        in_specs=in_specs,
        out_specs=pl.BlockSpec((n_feat + 1,), lambda i: (0,),
                               memory_space=pltpu.MemorySpace.SMEM),
        scratch_shapes=[pltpu.VMEM((_SUBLANES, lanes[f]), jnp.float32)
                        for f in range(n_feat)],
        compiler_params=pltpu.CompilerParams(
            dimension_semantics=("arbitrary",)),
    )(*inputs)

    losses = {n: out[i] for i, n in enumerate(names)}
    return out[n_feat], losses


if __name__ == "__main__":
    key = jax.random.PRNGKey(0)
    # Feature dims implied by typical facial features:
    #   landmarks: 68 2-D points -> 136, au: 17, pose: 3, gaze: 2
    dims = {"landmarks": 136, "au": 17, "pose": 3, "gaze": 2}

    def make_inputs(key, b, t, dtype):
        gt, pred = {}, {}
        for name, d in dims.items():
            key, k1, k2 = jax.random.split(key, 3)
            gt[name] = jax.random.normal(k1, (b, t, d),
                                         dtype=jnp.float32).astype(dtype)
            pred[name] = jax.random.normal(k2, (b, t, d),
                                           dtype=jnp.float32).astype(dtype)
        return key, gt, pred

    def check(gt, pred, **kw):
        total, losses = multi_facial_reconstruction_loss(
            gt, pred, use_pallas=True, **kw)
        total = jax.block_until_ready(total)
        ref_losses = {n: jnp.mean((pred[n].astype(jnp.float32)
                                   - gt[n].astype(jnp.float32)) ** 2)
                      for n in dims}
        ref_total = sum(FEATURE_WEIGHTS[n] * ref_losses[n] for n in dims)
        assert jnp.allclose(total, ref_total, rtol=1e-5, atol=1e-6), (
            total, ref_total)
        for n in dims:
            assert jnp.allclose(losses[n], ref_losses[n],
                                rtol=1e-5, atol=1e-6), (n, losses[n],
                                                        ref_losses[n])

    # 1) Module-typical small shapes: single tile, single grid step.
    key, gt, pred = make_inputs(key, 2, 8, jnp.float32)
    check(gt, pred)

    # 2) Row count not a multiple of 8 / of the chunk size: exercises the
    #    static remainder + sub-8 tail path (grid = 1, no boundary mask).
    key, gt, pred = make_inputs(key, 3, 11, jnp.float32)
    check(gt, pred)

    # 3) Multi-step grid with a partial last tile + bf16 inputs: exercises
    #    the fori_loop chunking, the pl.when-gated boundary mask and the
    #    in-kernel upcast.
    key, gt, pred = make_inputs(key, 2, 40, jnp.bfloat16)
    check(gt, pred, max_tile_rows=72)

    print("KERNEL_OK")
</pallas_src>

<mosaic_0001>
module attributes {stable_mosaic.version = 11 : i64} {
  func.func @kernel(%arg0: i32, %arg1: memref<16x136xf32, #tpu.memory_space<vmem>>, %arg2: memref<16x136xf32, #tpu.memory_space<vmem>>, %arg3: memref<16x17xf32, #tpu.memory_space<vmem>>, %arg4: memref<16x17xf32, #tpu.memory_space<vmem>>, %arg5: memref<16x3xf32, #tpu.memory_space<vmem>>, %arg6: memref<16x3xf32, #tpu.memory_space<vmem>>, %arg7: memref<16x2xf32, #tpu.memory_space<vmem>>, %arg8: memref<16x2xf32, #tpu.memory_space<vmem>>, %arg9: memref<5xf32, #tpu.memory_space<smem>>, %arg10: memref<8x136xf32, #tpu.memory_space<vmem>>, %arg11: memref<8x17xf32, #tpu.memory_space<vmem>>, %arg12: memref<8x3xf32, #tpu.memory_space<vmem>>, %arg13: memref<8x2xf32, #tpu.memory_space<vmem>>) attributes {dimension_semantics = [#tpu.dimension_semantics<arbitrary>], iteration_bounds = array<i64: 1>, scalar_prefetch = 0 : i64, scratch_operands = 4 : i64, tpu.core_type = #tpu.core_type<tc>, window_params = [{transform_indices = @transform_0, window_bounds = array<i64: 16, 136>}, {transform_indices = @transform_1, window_bounds = array<i64: 16, 136>}, {transform_indices = @transform_2, window_bounds = array<i64: 16, 17>}, {transform_indices = @transform_3, window_bounds = array<i64: 16, 17>}, {transform_indices = @transform_4, window_bounds = array<i64: 16, 3>}, {transform_indices = @transform_5, window_bounds = array<i64: 16, 3>}, {transform_indices = @transform_6, window_bounds = array<i64: 16, 2>}, {transform_indices = @transform_7, window_bounds = array<i64: 16, 2>}, {transform_indices = @transform_8, window_bounds = array<i64: 5>}]} {
    %c0_i32 = arith.constant 0 : i32
    %0 = arith.cmpi eq, %arg0, %c0_i32 : i32
    %1 = arith.extui %0 : i1 to i32
    %c0_i32_0 = arith.constant 0 : i32
    %2 = arith.cmpi ne, %1, %c0_i32_0 : i32
    scf.if %2 {
      %cst = arith.constant 0.000000e+00 : f32
      %46 = vector.broadcast %cst : f32 to vector<8x136xf32>
      %c0_34 = arith.constant 0 : index
      %c0_35 = arith.constant 0 : index
      %47 = vector.load %arg10[%c0_34, %c0_35] : memref<8x136xf32, #tpu.memory_space<vmem>>, vector<8x136xf32>
      tpu.vector_store %arg10[%c0_34, %c0_35], %46 {strides = array<i32>} : memref<8x136xf32, #tpu.memory_space<vmem>>, vector<8x136xf32>,
      %cst_36 = arith.constant 0.000000e+00 : f32
      %48 = vector.broadcast %cst_36 : f32 to vector<8x17xf32>
      %c0_37 = arith.constant 0 : index
      %c0_38 = arith.constant 0 : index
      %49 = vector.load %arg11[%c0_37, %c0_38] : memref<8x17xf32, #tpu.memory_space<vmem>>, vector<8x17xf32>
      tpu.vector_store %arg11[%c0_37, %c0_38], %48 {strides = array<i32>} : memref<8x17xf32, #tpu.memory_space<vmem>>, vector<8x17xf32>,
      %cst_39 = arith.constant 0.000000e+00 : f32
      %50 = vector.broadcast %cst_39 : f32 to vector<8x3xf32>
      %c0_40 = arith.constant 0 : index
      %c0_41 = arith.constant 0 : index
      %51 = vector.load %arg12[%c0_40, %c0_41] : memref<8x3xf32, #tpu.memory_space<vmem>>, vector<8x3xf32>
      tpu.vector_store %arg12[%c0_40, %c0_41], %50 {strides = array<i32>} : memref<8x3xf32, #tpu.memory_space<vmem>>, vector<8x3xf32>,
      %cst_42 = arith.constant 0.000000e+00 : f32
      %52 = vector.broadcast %cst_42 : f32 to vector<8x2xf32>
      %c0_43 = arith.constant 0 : index
      %c0_44 = arith.constant 0 : index
      %53 = vector.load %arg13[%c0_43, %c0_44] : memref<8x2xf32, #tpu.memory_space<vmem>>, vector<8x2xf32>
      tpu.vector_store %arg13[%c0_43, %c0_44], %52 {strides = array<i32>} : memref<8x2xf32, #tpu.memory_space<vmem>>, vector<8x2xf32>,
    } else {
    }
    %c0 = arith.constant 0 : index
    %c0_1 = arith.constant 0 : index
    %3 = vector.load %arg10[%c0, %c0_1] : memref<8x136xf32, #tpu.memory_space<vmem>>, vector<8x136xf32>
    %c0_2 = arith.constant 0 : index
    %c0_3 = arith.constant 0 : index
    %4 = vector.load %arg1[%c0_2, %c0_3] : memref<16x136xf32, #tpu.memory_space<vmem>>, vector<16x136xf32>
    %c0_4 = arith.constant 0 : index
    %c0_5 = arith.constant 0 : index
    %5 = vector.load %arg2[%c0_4, %c0_5] : memref<16x136xf32, #tpu.memory_space<vmem>>, vector<16x136xf32>
    %6 = arith.subf %4, %5 : vector<16x136xf32>
    %7 = arith.mulf %6, %6 : vector<16x136xf32>
    %8 = vector.extract_strided_slice %7 {offsets = [0, 0], sizes = [8, 136], strides = [1, 1]} : vector<16x136xf32> to vector<8x136xf32>
    %9 = vector.extract_strided_slice %7 {offsets = [8, 0], sizes = [8, 136], strides = [1, 1]} : vector<16x136xf32> to vector<8x136xf32>
    %10 = arith.addf %8, %9 : vector<8x136xf32>
    %11 = arith.addf %3, %10 : vector<8x136xf32>
    %c0_6 = arith.constant 0 : index
    %c0_7 = arith.constant 0 : index
    %12 = vector.load %arg10[%c0_6, %c0_7] : memref<8x136xf32, #tpu.memory_space<vmem>>, vector<8x136xf32>
    tpu.vector_store %arg10[%c0_6, %c0_7], %11 {strides = array<i32>} : memref<8x136xf32, #tpu.memory_space<vmem>>, vector<8x136xf32>,
    %c0_8 = arith.constant 0 : index
    %c0_9 = arith.constant 0 : index
    %13 = vector.load %arg11[%c0_8, %c0_9] : memref<8x17xf32, #tpu.memory_space<vmem>>, vector<8x17xf32>
    %c0_10 = arith.constant 0 : index
    %c0_11 = arith.constant 0 : index
    %14 = vector.load %arg3[%c0_10, %c0_11] : memref<16x17xf32, #tpu.memory_space<vmem>>, vector<16x17xf32>
    %c0_12 = arith.constant 0 : index
    %c0_13 = arith.constant 0 : index
    %15 = vector.load %arg4[%c0_12, %c0_13] : memref<16x17xf32, #tpu.memory_space<vmem>>, vector<16x17xf32>
    %16 = arith.subf %14, %15 : vector<16x17xf32>
    %17 = arith.mulf %16, %16 : vector<16x17xf32>
    %18 = vector.extract_strided_slice %17 {offsets = [0, 0], sizes = [8, 17], strides = [1, 1]} : vector<16x17xf32> to vector<8x17xf32>
    %19 = vector.extract_strided_slice %17 {offsets = [8, 0], sizes = [8, 17], strides = [1, 1]} : vector<16x17xf32> to vector<8x17xf32>
    %20 = arith.addf %18, %19 : vector<8x17xf32>
    %21 = arith.addf %13, %20 : vector<8x17xf32>
    %c0_14 = arith.constant 0 : index
    %c0_15 = arith.constant 0 : index
    %22 = vector.load %arg11[%c0_14, %c0_15] : memref<8x17xf32, #tpu.memory_space<vmem>>, vector<8x17xf32>
    tpu.vector_store %arg11[%c0_14, %c0_15], %21 {strides = array<i32>} : memref<8x17xf32, #tpu.memory_space<vmem>>, vector<8x17xf32>,
    %c0_16 = arith.constant 0 : index
    %c0_17 = arith.constant 0 : index
    %23 = vector.load %arg12[%c0_16, %c0_17] : memref<8x3xf32, #tpu.memory_space<vmem>>, vector<8x3xf32>
    %c0_18 = arith.constant 0 : index
    %c0_19 = arith.constant 0 : index
    %24 = vector.load %arg5[%c0_18, %c0_19] : memref<16x3xf32, #tpu.memory_space<vmem>>, vector<16x3xf32>
    %c0_20 = arith.constant 0 : index
    %c0_21 = arith.constant 0 : index
    %25 = vector.load %arg6[%c0_20, %c0_21] : memref<16x3xf32, #tpu.memory_space<vmem>>, vector<16x3xf32>
    %26 = arith.subf %24, %25 : vector<16x3xf32>
    %27 = arith.mulf %26, %26 : vector<16x3xf32>
    %28 = vector.extract_strided_slice %27 {offsets = [0, 0], sizes = [8, 3], strides = [1, 1]} : vector<16x3xf32> to vector<8x3xf32>
    %29 = vector.extract_strided_slice %27 {offsets = [8, 0], sizes = [8, 3], strides = [1, 1]} : vector<16x3xf32> to vector<8x3xf32>
    %30 = arith.addf %28, %29 : vector<8x3xf32>
    %31 = arith.addf %23, %30 : vector<8x3xf32>
    %c0_22 = arith.constant 0 : index
    %c0_23 = arith.constant 0 : index
    %32 = vector.load %arg12[%c0_22, %c0_23] : memref<8x3xf32, #tpu.memory_space<vmem>>, vector<8x3xf32>
    tpu.vector_store %arg12[%c0_22, %c0_23], %31 {strides = array<i32>} : memref<8x3xf32, #tpu.memory_space<vmem>>, vector<8x3xf32>,
    %c0_24 = arith.constant 0 : index
    %c0_25 = arith.constant 0 : index
    %33 = vector.load %arg13[%c0_24, %c0_25] : memref<8x2xf32, #tpu.memory_space<vmem>>, vector<8x2xf32>
    %c0_26 = arith.constant 0 : index
    %c0_27 = arith.constant 0 : index
    %34 = vector.load %arg7[%c0_26, %c0_27] : memref<16x2xf32, #tpu.memory_space<vmem>>, vector<16x2xf32>
    %c0_28 = arith.constant 0 : index
    %c0_29 = arith.constant 0 : index
    %35 = vector.load %arg8[%c0_28, %c0_29] : memref<16x2xf32, #tpu.memory_space<vmem>>, vector<16x2xf32>
    %36 = arith.subf %34, %35 : vector<16x2xf32>
    %37 = arith.mulf %36, %36 : vector<16x2xf32>
    %38 = vector.extract_strided_slice %37 {offsets = [0, 0], sizes = [8, 2], strides = [1, 1]} : vector<16x2xf32> to vector<8x2xf32>
    %39 = vector.extract_strided_slice %37 {offsets = [8, 0], sizes = [8, 2], strides = [1, 1]} : vector<16x2xf32> to vector<8x2xf32>
    %40 = arith.addf %38, %39 : vector<8x2xf32>
    %41 = arith.addf %33, %40 : vector<8x2xf32>
    %c0_30 = arith.constant 0 : index
    %c0_31 = arith.constant 0 : index
    %42 = vector.load %arg13[%c0_30, %c0_31] : memref<8x2xf32, #tpu.memory_space<vmem>>, vector<8x2xf32>
    tpu.vector_store %arg13[%c0_30, %c0_31], %41 {strides = array<i32>} : memref<8x2xf32, #tpu.memory_space<vmem>>, vector<8x2xf32>,
    %c0_i32_32 = arith.constant 0 : i32
    %43 = arith.cmpi eq, %arg0, %c0_i32_32 : i32
    %44 = arith.extui %43 : i1 to i32
    %c0_i32_33 = arith.constant 0 : i32
    %45 = arith.cmpi ne, %44, %c0_i32_33 : i32
    scf.if %45 {
      %c0_34 = arith.constant 0 : index
      %c0_35 = arith.constant 0 : index
      %46 = vector.load %arg10[%c0_34, %c0_35] : memref<8x136xf32, #tpu.memory_space<vmem>>, vector<8x136xf32>
      %47 = vector.shape_cast %46 : vector<8x136xf32> to vector<1x8x136xf32>
      %cst = arith.constant dense<0.000000e+00> : vector<1xf32>
      %48 = vector.multi_reduction <add>, %47, %cst [1, 2] : vector<1x8x136xf32> to vector<1xf32>
      %49 = vector.shape_cast %48 : vector<1xf32> to vector<1x1x1xf32>
      %50 = vector.extract %49[0, 0, 0] : f32 from vector<1x1x1xf32>
      %cst_36 = arith.constant 4.59558825E-4 : f32
      %51 = arith.mulf %50, %cst_36 : f32
      %c0_37 = arith.constant 0 : index
      %52 = memref.load %arg9[%c0_37] : memref<5xf32, #tpu.memory_space<smem>>
      memref.store %51, %arg9[%c0_37] : memref<5xf32, #tpu.memory_space<smem>>
      %cst_38 = arith.constant 1.000000e+00 : f32
      %53 = arith.mulf %cst_38, %51 : f32
      %cst_39 = arith.constant 0.000000e+00 : f32
      %54 = arith.addf %cst_39, %53 : f32
      %c0_40 = arith.constant 0 : index
      %c0_41 = arith.constant 0 : index
      %55 = vector.load %arg11[%c0_40, %c0_41] : memref<8x17xf32, #tpu.memory_space<vmem>>, vector<8x17xf32>
      %56 = vector.shape_cast %55 : vector<8x17xf32> to vector<1x8x17xf32>
      %cst_42 = arith.constant dense<0.000000e+00> : vector<1xf32>
      %57 = vector.multi_reduction <add>, %56, %cst_42 [1, 2] : vector<1x8x17xf32> to vector<1xf32>
      %58 = vector.shape_cast %57 : vector<1xf32> to vector<1x1x1xf32>
      %59 = vector.extract %58[0, 0, 0] : f32 from vector<1x1x1xf32>
      %cst_43 = arith.constant 0.0036764706 : f32
      %60 = arith.mulf %59, %cst_43 : f32
      %c1 = arith.constant 1 : index
      %61 = memref.load %arg9[%c1] : memref<5xf32, #tpu.memory_space<smem>>
      memref.store %60, %arg9[%c1] : memref<5xf32, #tpu.memory_space<smem>>
      %cst_44 = arith.constant 8.000000e-01 : f32
      %62 = arith.mulf %cst_44, %60 : f32
      %63 = arith.addf %54, %62 : f32
      %c0_45 = arith.constant 0 : index
      %c0_46 = arith.constant 0 : index
      %64 = vector.load %arg12[%c0_45, %c0_46] : memref<8x3xf32, #tpu.memory_space<vmem>>, vector<8x3xf32>
      %65 = vector.shape_cast %64 : vector<8x3xf32> to vector<1x8x3xf32>
      %cst_47 = arith.constant dense<0.000000e+00> : vector<1xf32>
      %66 = vector.multi_reduction <add>, %65, %cst_47 [1, 2] : vector<1x8x3xf32> to vector<1xf32>
      %67 = vector.shape_cast %66 : vector<1xf32> to vector<1x1x1xf32>
      %68 = vector.extract %67[0, 0, 0] : f32 from vector<1x1x1xf32>
      %cst_48 = arith.constant 0.020833334 : f32
      %69 = arith.mulf %68, %cst_48 : f32
      %c2 = arith.constant 2 : index
      %70 = memref.load %arg9[%c2] : memref<5xf32, #tpu.memory_space<smem>>
      memref.store %69, %arg9[%c2] : memref<5xf32, #tpu.memory_space<smem>>
      %cst_49 = arith.constant 6.000000e-01 : f32
      %71 = arith.mulf %cst_49, %69 : f32
      %72 = arith.addf %63, %71 : f32
      %c0_50 = arith.constant 0 : index
      %c0_51 = arith.constant 0 : index
      %73 = vector.load %arg13[%c0_50, %c0_51] : memref<8x2xf32, #tpu.memory_space<vmem>>, vector<8x2xf32>
      %74 = vector.shape_cast %73 : vector<8x2xf32> to vector<1x8x2xf32>
      %cst_52 = arith.constant dense<0.000000e+00> : vector<1xf32>
      %75 = vector.multi_reduction <add>, %74, %cst_52 [1, 2] : vector<1x8x2xf32> to vector<1xf32>
      %76 = vector.shape_cast %75 : vector<1xf32> to vector<1x1x1xf32>
      %77 = vector.extract %76[0, 0, 0] : f32 from vector<1x1x1xf32>
      %cst_53 = arith.constant 3.125000e-02 : f32
      %78 = arith.mulf %77, %cst_53 : f32
      %c3 = arith.constant 3 : index
      %79 = memref.load %arg9[%c3] : memref<5xf32, #tpu.memory_space<smem>>
      memref.store %78, %arg9[%c3] : memref<5xf32, #tpu.memory_space<smem>>
      %cst_54 = arith.constant 4.000000e-01 : f32
      %80 = arith.mulf %cst_54, %78 : f32
      %81 = arith.addf %72, %80 : f32
      %c4 = arith.constant 4 : index
      %82 = memref.load %arg9[%c4] : memref<5xf32, #tpu.memory_space<smem>>
      memref.store %81, %arg9[%c4] : memref<5xf32, #tpu.memory_space<smem>>
    } else {
    }
    return
  }
  func.func @transform_0(%arg0: i32) -> (i32, i32) {
    %c0_i32 = arith.constant 0 : i32
    %c0_i32_0 = arith.constant 0 : i32
    return %arg0, %c0_i32 : i32, i32
  }
  func.func @transform_1(%arg0: i32) -> (i32, i32) {
    %c0_i32 = arith.constant 0 : i32
    %c0_i32_0 = arith.constant 0 : i32
    return %arg0, %c0_i32 : i32, i32
  }
  func.func @transform_2(%arg0: i32) -> (i32, i32) {
    %c0_i32 = arith.constant 0 : i32
    %c0_i32_0 = arith.constant 0 : i32
    return %arg0, %c0_i32 : i32, i32
  }
  func.func @transform_3(%arg0: i32) -> (i32, i32) {
    %c0_i32 = arith.constant 0 : i32
    %c0_i32_0 = arith.constant 0 : i32
    return %arg0, %c0_i32 : i32, i32
  }
  func.func @transform_4(%arg0: i32) -> (i32, i32) {
    %c0_i32 = arith.constant 0 : i32
    %c0_i32_0 = arith.constant 0 : i32
    return %arg0, %c0_i32 : i32, i32
  }
  func.func @transform_5(%arg0: i32) -> (i32, i32) {
    %c0_i32 = arith.constant 0 : i32
    %c0_i32_0 = arith.constant 0 : i32
    return %arg0, %c0_i32 : i32, i32
  }
  func.func @transform_6(%arg0: i32) -> (i32, i32) {
    %c0_i32 = arith.constant 0 : i32
    %c0_i32_0 = arith.constant 0 : i32
    return %arg0, %c0_i32 : i32, i32
  }
  func.func @transform_7(%arg0: i32) -> (i32, i32) {
    %c0_i32 = arith.constant 0 : i32
    %c0_i32_0 = arith.constant 0 : i32
    return %arg0, %c0_i32 : i32, i32
  }
  func.func @transform_8(%arg0: i32) -> i32 {
    %c0_i32 = arith.constant 0 : i32
    %c0_i32_0 = arith.constant 0 : i32
    return %c0_i32 : i32
  }
}

</mosaic_0001>

<bundles_post_ra>
// kernel: tpu_custom_call.1
= control target key start
LH: loop header
LB: loop body
LE: loop exit
PB: predicated region body
PF: predicated region fallthrough
CT: control target
= control target key end

     0   :  { %13 = vsyncpa [#allocation7], 0  ;;  %s372_s0 = inlined_call_operand.vmem [shape: f32[16,136], index: 0, kind: input, shape index: {}]   ;;  %s373_s1 = inlined_call_operand.vmem [shape: f32[16,136], index: 1, kind: input, shape index: {}]   ;;  %s374_s2 = inlined_call_operand.hbm [shape: f32[16,17], index: 2, kind: input, shape index: {}]   ;;  %s375_s3 = inlined_call_operand.vmem [shape: f32[16,17], index: 3, kind: input, shape index: {}]   ;;  %s376_s4 = inlined_call_operand.vmem [shape: f32[16,3], index: 4, kind: input, shape index: {}]   ;;  %s377_s5 = inlined_call_operand.vmem [shape: f32[16,3], index: 5, kind: input, shape index: {}]   ;;  %s378_s6 = inlined_call_operand.vmem [shape: f32[16,2], index: 6, kind: input, shape index: {}]   ;;  %s379_s7 = inlined_call_operand.vmem [shape: f32[16,2], index: 7, kind: input, shape index: {}]   ;;  %s380_s8 = inlined_call_operand.hbm [shape: f32[5], index: 8, kind: output, shape index: {}]  }
   0x1   :  { %14 = vsyncpa [#allocation8], 0  ;;  %s250_s27 = smov [#allocation6]  }
   0x2   :  { %s24_s28 = sshll.u32 %s250_s27, 4  ;;  %s25_s28 = int_to_ptr.vmem [resolvable:$true] %s24_s28 }
   0x3   :  { %s226_s29 = scalar_lea.vmem %s25_s28, 256  ;;  %p231_p1 = scmp.lt.s32.totalorder %s25_s28, %s25_s28 }
   0x4   :  { %p227_p0 = scmp.ne.s32.totalorder %s25_s28, %s226_s29  ;;  %p232_p2 = scmp.lt.s32.totalorder %s226_s29, %s226_s29 }
   0x6   :  { %p233_p3 = por %p232_p2, %p231_p1 }
   0x8   :  { %p234_p4 = pnand %p233_p3, %p227_p0 }
   0xa   :  { %237 = shalt.err (!%p234_p4)
}
   0xb   :  { %s251_s30 = smov 128   ;;  %s252_s9 = smov 8  }
   0xc   :  { %30 = dma.hbm_to_vmem [thread:$0]  %s374_s2, 256, %s25_s28, [#allocation7], %s251_s30, %s251_s30, %s252_s9  }
   0xd   :  { %246 = dma.done.wait [#allocation7], 256  }
   0xe   :  { %247 = vsyncadd [#allocation7], 4294967040  ;;  %vm53_vm0 = vcmask 23552   ;;  %vm49_vm1 = vcmask 64512   ;;  %vm55_vm2 = vcmask 15360   ;;  %v253_v0 = vmov 0.0  }
   0xf   :  { %54 = vst.msk [vmem:[#allocation4] sm:$0xff] %vm53_vm0, %v253_v0  ;;  %vm51_vm3 = vcmask 138240   ;;  %v59_v1 = vld [vmem:[%s372_s0] sm:$0xff]  ;;  %v61_v2 = vld [vmem:[%s372_s0 + $0x10] sm:$0xff]  ;;  %v97_v8 = vld [vmem:[%s376_s4 + $0x8] sm:$0xff] }
  0x10   :  { %50 = vst.msk [vmem:[#allocation2 + $0x8] sm:$0xff] %vm49_vm1, %v253_v0  ;;  %v63_v3 = vld [vmem:[%s373_s1] sm:$0xff]  ;;  %v65_v4 = vld [vmem:[%s373_s1 + $0x10] sm:$0xff]  ;;  %v99_v10 = vld [vmem:[%s377_s5 + $0x8] sm:$0xff] }
  0x11   :  { %56 = vst.msk [vmem:[#allocation5] sm:$0xff] %vm55_vm2, %v253_v0  ;;  %v67_v5 = vsub.f32 %v59_v1, %v63_v3  ;;  %v96_v6 = vld [vmem:[%s376_s4] sm:$0xff]  ;;  %v69_v7 = vsub.f32 %v61_v2, %v65_v4  ;;  %v101_v13 = vsub.f32 %v97_v8, %v99_v10  ;;  %v60_v14 = vld [vmem:[%s372_s0 + $0x8] sm:$0xff]  ;;  %v62_v15 = vld [vmem:[%s372_s0 + $0x18] sm:$0xff]  ;;  %s254_s4 = smov [#allocation9]  }
  0x12   :  { %52 = vst.msk [vmem:[#allocation3] sm:$0xff] %vm51_vm3, %v253_v0  ;;  %v98_v9 = vld [vmem:[%s377_s5] sm:$0xff]  ;;  %v64_v17 = vld [vmem:[%s373_s1 + $0x8] sm:$0xff]  ;;  %v66_v18 = vld [vmem:[%s373_s1 + $0x18] sm:$0xff] }
  0x13   :  { %v71_v11 = vmul.f32 %v67_v5, %v67_v5  ;;  %v100_v12 = vsub.f32 %v96_v6, %v98_v9  ;;  %v73_v16 = vmul.f32 %v69_v7, %v69_v7  ;;  %v103_v20 = vmul.f32 %v101_v13, %v101_v13  ;;  %v109_v23 = vld [vmem:[%s378_s6] sm:$0xff]  ;;  %v110_v24 = vld [vmem:[%s378_s6 + $0x8] sm:$0xff]  ;;  %v84_v35 = vld [vmem:[#allocation6 + $0x8] sm:$0xff] }
  0x14   :  { %v68_v21 = vsub.f32 %v60_v14, %v64_v17  ;;  %v70_v22 = vsub.f32 %v62_v15, %v66_v18  ;;  %v111_v25 = vld [vmem:[%s379_s7] sm:$0xff]  ;;  %v112_v28 = vld [vmem:[%s379_s7 + $0x8] sm:$0xff] }
  0x15   :  { %v102_v19 = vmul.f32 %v100_v12, %v100_v12  ;;  %v75_v26 = vadd.f32 %v73_v16, %v71_v11  ;;  %v113_v29 = vsub.f32 %v109_v23, %v111_v25  ;;  %v83_v30 = vld [vmem:[#allocation6] sm:$0xff]  ;;  %v114_v34 = vsub.f32 %v110_v24, %v112_v28  ;;  %v85_v36 = vld [vmem:[%s375_s3] sm:$0xff] }
  0x16   :  { %v95_v27 = vld [vmem:[#allocation4] sm:$0xff]  ;;  %v72_v32 = vmul.f32 %v68_v21, %v68_v21  ;;  %v74_v33 = vmul.f32 %v70_v22, %v70_v22  ;;  %v86_v37 = vld [vmem:[%s375_s3 + $0x8] sm:$0xff]  ;;  %v87_v40 = vsub.f32 %v83_v30, %v85_v36 }
  0x17   :  { %v104_v31 = vadd.f32 %v103_v20, %v102_v19  ;;  %v58_v38 = vld [vmem:[#allocation2 + $0x8] sm:$0xff]  ;;  %v115_v39 = vmul.f32 %v113_v29, %v113_v29  ;;  %v88_v41 = vsub.f32 %v84_v35, %v86_v37  ;;  %v116_v44 = vmul.f32 %v114_v34, %v114_v34 }
  0x18   :  { %v76_v43 = vadd.f32 %v74_v33, %v72_v32  ;;  %v108_v45 = vld [vmem:[#allocation5] sm:$0xff]  ;;  %v89_v46 = vmul.f32 %v87_v40, %v87_v40 }
  0x19   :  { %v105_v42 = vadd.f32 %v104_v31, %v95_v27  ;;  %v90_v47 = vmul.f32 %v88_v41, %v88_v41  ;;  %v117_v49 = vadd.f32 %v116_v44, %v115_v39  ;;  %v82_v50 = vld [vmem:[#allocation3] sm:$0xff] }
  0x1a   :  { %v78_v48 = vadd.f32 %v76_v43, %v58_v38 }
  0x1b   :  { %107 = vst.msk [vmem:[#allocation4] sm:$0xff] %vm53_vm0, %v105_v42  ;;  %v91_v51 = vadd.f32 %v90_v47, %v89_v46  ;;  %v118_v52 = vadd.f32 %v117_v49, %v108_v45 }
  0x1c   :  { %81 = vst.msk [vmem:[#allocation2 + $0x8] sm:$0xff] %vm49_vm1, %v78_v48 }
  0x1d   :  { %v92_v53 = vadd.f32 %v91_v51, %v82_v50  ;;  %120 = vst.msk [vmem:[#allocation5] sm:$0xff] %vm55_vm2, %v118_v52 }
  0x1f   :  { %94 = vst.msk [vmem:[#allocation3] sm:$0xff] %vm51_vm3, %v92_v53 }
  0x22   :  { %v157_v54 = vld [vmem:[#allocation4] sm:$0xff] }
  0x23   :  { %v158_v55 = vsel %vm53_vm0, %v157_v54, 0.0  ;;  %v125_v56 = vld [vmem:[#allocation2 + $0x8] sm:$0xff] }
  0x24   :  { %159 = vadd.xlane.f32.xlu1 %v158_v55  ;;  %v126_v57 = vsel %vm49_vm1, %v125_v56, 0.0  ;;  %v173_v59 = vld [vmem:[#allocation5] sm:$0xff] }
  0x25   :  { %v127_v58 = vadd.f32 %v126_v57, %v75_v26  ;;  %v174_v60 = vsel %vm55_vm2, %v173_v59, 0.0 }
  0x26   :  { %v141_v61 = vld [vmem:[#allocation3] sm:$0xff] }
  0x27   :  { %128 = vadd.xlane.f32.xlu0 %v127_v58  ;;  %v142_v62 = vsel %vm51_vm3, %v141_v61, 0.0 }
  0x28   :  { %175 = vadd.xlane.f32.xlu1 %v174_v60 }
  0x2b   :  { %143 = vadd.xlane.f32.xlu0 %v142_v62 }
  0xad   :  { %v160_v63 = vpop.xlane.xlu1 %159 }
  0xae   :  { %v161_v0 = vrot.slane %v160_v63, 4 }
  0xb0   :  { %v162_v1 = vadd.f32 %v161_v0, %v160_v63  ;;  %v129_v2 = vpop.xlane.xlu0 %128 }
  0xb1   :  { %v176_v3 = vpop.xlane.xlu1 %175  ;;  %v130_v4 = vrot.slane %v129_v2, 4 }
  0xb2   :  { %v177_v5 = vrot.slane %v176_v3, 4  ;;  %v163_v8 = vrot.slane %v162_v1, 2 }
  0xb3   :  { %v131_v6 = vadd.f32 %v130_v4, %v129_v2 }
  0xb4   :  { %v178_v7 = vadd.f32 %v177_v5, %v176_v3  ;;  %v144_v9 = vpop.xlane.xlu0 %143  ;;  %v164_v15 = vadd.f32 %v163_v8, %v162_v1 }
  0xb5   :  { %v132_v10 = vrot.slane %v131_v6, 2  ;;  %v145_v12 = vrot.slane %v144_v9, 4 }
  0xb6   :  { %v179_v11 = vrot.slane %v178_v7, 2  ;;  %v165_v21 = vrot.slane %v164_v15, 1 }
  0xb7   :  { %v146_v13 = vadd.f32 %v145_v12, %v144_v9  ;;  %v133_v14 = vadd.f32 %v132_v10, %v131_v6 }
  0xb8   :  { %v180_v16 = vadd.f32 %v179_v11, %v178_v7  ;;  %v166_v25 = vadd.f32 %v165_v21, %v164_v15 }
  0xb9   :  { %v147_v17 = vrot.slane %v146_v13, 2  ;;  %v134_v18 = vrot.slane %v133_v14, 1 }
  0xba   :  { %v181_v23 = vrot.slane %v180_v16, 1 }
  0xbb   :  { %v148_v19 = vadd.f32 %v147_v17, %v146_v13  ;;  %v135_v20 = vadd.f32 %v134_v18, %v133_v14 }
  0xbc   :  { %v182_v26 = vadd.f32 %v181_v23, %v180_v16 }
  0xbd   :  { %205 = vpush %v135_v20  ;;  %v149_v22 = vrot.slane %v148_v19, 1 }
  0xbf   :  { %v150_v24 = vadd.f32 %v149_v22, %v148_v19 }
  0xc1   :  { %207 = vpush %v150_v24 }
  0xc2   :  { %209 = vpush %v166_v25 }
  0xc3   :  { %211 = vpush %v182_v26 }
  0xee   :  { %s206_s3 = spop %205 }
  0xef   :  { %s137_s7 = smul.f32 0.00045955883, %s206_s3 }
  0xf1   :  { %139 = sst [smem:[#allocation9]] %s137_s7 }
  0xf2   :  { %s208_s19 = spop %207 }
  0xf3   :  { %s152_s20 = smul.f32 0.0036764706, %s208_s19  ;;  %s210_s21 = spop %209 }
  0xf4   :  { %s168_s22 = smul.f32 0.020833334, %s210_s21  ;;  %s212_s23 = spop %211 }
  0xf5   :  { %154 = sst [smem:[#allocation9 + $0x1]] %s152_s20  ;;  %s155_s24 = smul.f32 0.8, %s152_s20 }
  0xf6   :  { %170 = sst [smem:[#allocation9 + $0x2]] %s168_s22  ;;  %s171_s25 = smul.f32 0.6, %s168_s22 }
  0xf7   :  { %s156_s26 = sadd.f32 %s155_s24, %s137_s7  ;;  %s184_s27 = smul.f32 0.03125, %s212_s23 }
  0xf9   :  { %s172_s28 = sadd.f32 %s171_s25, %s156_s26  ;;  %s187_s29 = smul.f32 0.4, %s184_s27 }
  0xfa   :  { %186 = sst [smem:[#allocation9 + $0x3]] %s184_s27 }
  0xfb   :  { %s188_s30 = sadd.f32 %s187_s29, %s172_s28 }
  0xfd   :  { %190 = sst [smem:[#allocation9 + $0x4]] %s188_s30 }
  0xfe   :  { %198 = dma.smem_to_hbm %s254_s4, 16, %s380_s8, [#allocation8]  }
  0xff   :  { %248 = dma.done.wait [#allocation8], 16  }
 0x100   :  { %249 = vsyncadd [#allocation8], 4294967280 }
 0x101   :  { %202 = sfence }
 0x102   :  { %203 = vsyncpa [#allocation7], 1 }
 0x103   :  { %204 = vsyncpa [#allocation8], 1 }

</bundles_post_ra>
